<compile_context>
chip_gen: v5e
topology: v5e:2x2
jax: 0.10.0
libtpu: 0.0.40
codegen_flags: <defaults>
</compile_context>

<pallas_src>
import jax
import jax.numpy as jnp
from jax.experimental import pallas as pl
from jax.experimental.pallas import tpu as pltpu


def moveblock_kernel(x_ref, p_ref, o_ref):
    # x_ref: (n_tile, c_tile, hw_tile)  activations
    # p_ref: (c_tile, 3)                [bias1, prelu_slope, bias2] per channel
    # o_ref: (n_tile, c_tile, hw_tile)
    p = p_ref[...]
    b1 = p[:, 0:1][None]            # (1, c_tile, 1) -> broadcasts over N and HW
    a = p[:, 1:2][None]
    b2 = p[:, 2:3][None]

    y = x_ref[...] + b1                      # move1 (LearnableBias)
    y = jnp.where(y >= 0, y, a * y)          # PReLU (per-channel slope)
    o_ref[...] = y + b2                      # move2 (LearnableBias)


def _pick_tiles(N, C, HW, itemsize, target_block_bytes):
    """Choose (n_tile, c_tile, hw_tile) so one block is ~target_block_bytes."""
    max_elems = max(1, target_block_bytes // itemsize)

    # Lane (spatial) axis: multiple of 128 dividing HW, else full extent.
    if HW % 128 == 0:
        hw_tile = max(128, min(HW, (max_elems // 128) * 128))
        while HW % hw_tile:
            hw_tile -= 128
    else:
        hw_tile = HW

    # Sublane (channel) axis: multiple of 8 dividing C, else full extent.
    c_budget = max(1, max_elems // hw_tile)
    if C % 8 == 0:
        c_tile = min(C, max(8, (c_budget // 8) * 8))
        while C % c_tile:
            c_tile -= 8
    else:
        c_tile = C

    # Batch axis: fill the remaining block budget.
    n_budget = max(1, max_elems // (hw_tile * c_tile))
    n_tile = min(N, n_budget)
    while N % n_tile:
        n_tile -= 1

    # Keep the grid multi-step when possible so both v7x TensorCores get work.
    if (N // n_tile) * (C // c_tile) * (HW // hw_tile) == 1 and N > 1:
        n_tile = max(1, N // 2)
        while N % n_tile:
            n_tile -= 1

    return n_tile, c_tile, hw_tile


def move_block(x, bias1, prelu_weight, bias2, *, target_block_bytes=2 * 1024 * 1024):
    """x: (N, C, H, W); bias1/bias2: per-channel; prelu_weight: (C,) or (1,)."""
    N, C, H, W = x.shape
    HW = H * W
    itemsize = jnp.dtype(x.dtype).itemsize

    x3 = x.reshape(N, C, HW)

    # Stack params into one (C, 3) array (single small resident block instead
    # of 3 per-step DMAs).  Handles PReLU(num_parameters=1) via broadcast.
    slope = jnp.broadcast_to(jnp.ravel(prelu_weight), (C,))
    params = jnp.stack(
        [jnp.ravel(bias1).astype(x.dtype),
         slope.astype(x.dtype),
         jnp.ravel(bias2).astype(x.dtype)],
        axis=1)                                              # (C, 3)

    n_tile, c_tile, hw_tile = _pick_tiles(N, C, HW, itemsize, target_block_bytes)
    grid = (N // n_tile, C // c_tile, HW // hw_tile)

    x_spec = pl.BlockSpec((n_tile, c_tile, hw_tile), lambda n, c, h: (n, c, h))
    # Param block index depends only on the channel block -> re-fetched only
    # when the channel block changes, resident across the n / hw grid axes.
    p_spec = pl.BlockSpec((c_tile, 3), lambda n, c, h: (c, 0))

    # VMEM budget: in + out blocks double-buffered, lane-padded param block,
    # plus slack.  Capped at v7x's 64 MiB physical VMEM.
    block_bytes = n_tile * c_tile * hw_tile * itemsize
    param_vmem = ((c_tile + 7) // 8) * 8 * 128 * itemsize
    est_vmem = 2 * 2 * block_bytes + 2 * param_vmem + (1 << 20)
    vmem_limit = int(min(64 * 1024 * 1024, max(2 * est_vmem, 16 * 1024 * 1024)))

    out3 = pl.pallas_call(
        moveblock_kernel,
        out_shape=jax.ShapeDtypeStruct((N, C, HW), x.dtype),
        grid_spec=pltpu.PrefetchScalarGridSpec(
            num_scalar_prefetch=0,
            grid=grid,
            in_specs=[x_spec, p_spec],
            out_specs=x_spec,
        ),
        compiler_params=pltpu.CompilerParams(
            dimension_semantics=("parallel", "parallel", "parallel"),
            vmem_limit_bytes=vmem_limit,
        ),
    )(x3, params)

    return out3.reshape(N, C, H, W)


def move_block_ref(x, bias1, prelu_weight, bias2):
    """Plain-JAX reference matching the PyTorch forward."""
    C = x.shape[1]
    b1 = jnp.ravel(bias1).reshape(1, C, 1, 1)
    a = jnp.broadcast_to(jnp.ravel(prelu_weight), (C,)).reshape(1, C, 1, 1)
    b2 = jnp.ravel(bias2).reshape(1, C, 1, 1)
    y = x + b1
    y = jnp.where(y >= 0, y, a * y)
    return y + b2


if __name__ == "__main__":
    key = jax.random.PRNGKey(0)
    k_x, k_b1, k_a, k_b2, k_x2 = jax.random.split(key, 5)

    # Primary case: NCHW input with per-channel params, as the module implies.
    N, C, H, W = 2, 4, 16, 16
    x = jax.random.normal(k_x, (N, C, H, W), dtype=jnp.float32)
    bias1 = 0.1 * jax.random.normal(k_b1, (C,), dtype=jnp.float32)
    prelu_w = jnp.full((C,), 0.25, dtype=jnp.float32) \
        + 0.05 * jax.random.normal(k_a, (C,), dtype=jnp.float32)
    bias2 = 0.1 * jax.random.normal(k_b2, (C,), dtype=jnp.float32)

    out = jax.block_until_ready(move_block(x, bias1, prelu_w, bias2))
    ref = move_block_ref(x, bias1, prelu_w, bias2)
    assert out.shape == (N, C, H, W)
    assert jnp.allclose(out, ref, atol=1e-6, rtol=1e-6), "mismatch vs reference (case 1)"

    # Awkward-shape case: C not a multiple of 8, H*W not a multiple of 128
    # (exercises the robust full-extent tiling fallback, no giant block).
    N2, C2, H2, W2 = 2, 3, 7, 7
    x2 = jax.random.normal(k_x2, (N2, C2, H2, W2), dtype=jnp.float32)
    b1_2 = 0.1 * jnp.arange(C2, dtype=jnp.float32)
    a_2 = jnp.full((C2,), 0.25, dtype=jnp.float32)
    b2_2 = -0.05 * jnp.arange(C2, dtype=jnp.float32)
    out2 = jax.block_until_ready(move_block(x2, b1_2, a_2, b2_2))
    ref2 = move_block_ref(x2, b1_2, a_2, b2_2)
    assert jnp.allclose(out2, ref2, atol=1e-6, rtol=1e-6), "mismatch vs reference (case 2)"

    print("KERNEL_OK")
</pallas_src>

<mosaic_0001>
module attributes {stable_mosaic.version = 11 : i64} {
  func.func @moveblock_kernel(%arg0: i32, %arg1: i32, %arg2: i32, %arg3: memref<1x4x256xf32, #tpu.memory_space<vmem>>, %arg4: memref<4x3xf32, #tpu.memory_space<vmem>>, %arg5: memref<1x4x256xf32, #tpu.memory_space<vmem>>) attributes {dimension_semantics = [#tpu.dimension_semantics<parallel>, #tpu.dimension_semantics<parallel>, #tpu.dimension_semantics<parallel>], iteration_bounds = array<i64: 2, 1, 1>, scalar_prefetch = 0 : i64, scratch_operands = 0 : i64, tpu.core_type = #tpu.core_type<tc>, window_params = [{transform_indices = @transform_0, window_bounds = array<i64: 1, 4, 256>}, {transform_indices = @transform_1, window_bounds = array<i64: 4, 3>}, {transform_indices = @transform_2, window_bounds = array<i64: 1, 4, 256>}]} {
    %c0 = arith.constant 0 : index
    %c0_0 = arith.constant 0 : index
    %0 = vector.load %arg4[%c0, %c0_0] : memref<4x3xf32, #tpu.memory_space<vmem>>, vector<4x3xf32>
    %1 = vector.extract_strided_slice %0 {offsets = [0, 0], sizes = [4, 1], strides = [1, 1]} : vector<4x3xf32> to vector<4x1xf32>
    %2 = vector.shape_cast %1 : vector<4x1xf32> to vector<1x4x1xf32>
    %3 = vector.extract_strided_slice %0 {offsets = [0, 1], sizes = [4, 1], strides = [1, 1]} : vector<4x3xf32> to vector<4x1xf32>
    %4 = vector.shape_cast %3 : vector<4x1xf32> to vector<1x4x1xf32>
    %5 = vector.extract_strided_slice %0 {offsets = [0, 2], sizes = [4, 1], strides = [1, 1]} : vector<4x3xf32> to vector<4x1xf32>
    %6 = vector.shape_cast %5 : vector<4x1xf32> to vector<1x4x1xf32>
    %c0_1 = arith.constant 0 : index
    %c0_2 = arith.constant 0 : index
    %c0_3 = arith.constant 0 : index
    %7 = vector.load %arg3[%c0_1, %c0_2, %c0_3] : memref<1x4x256xf32, #tpu.memory_space<vmem>>, vector<1x4x256xf32>
    %8 = vector.broadcast %2 : vector<1x4x1xf32> to vector<1x4x256xf32>
    %9 = arith.addf %7, %8 : vector<1x4x256xf32>
    %cst = arith.constant 0.000000e+00 : f32
    %10 = vector.broadcast %cst : f32 to vector<1x4x256xf32>
    %11 = arith.cmpf oge, %9, %10 : vector<1x4x256xf32>
    %12 = vector.broadcast %4 : vector<1x4x1xf32> to vector<1x4x256xf32>
    %13 = arith.mulf %12, %9 : vector<1x4x256xf32>
    %14 = arith.select %11, %9, %13 : vector<1x4x256xi1>, vector<1x4x256xf32>
    %15 = vector.broadcast %6 : vector<1x4x1xf32> to vector<1x4x256xf32>
    %16 = arith.addf %14, %15 : vector<1x4x256xf32>
    %c0_4 = arith.constant 0 : index
    %c0_5 = arith.constant 0 : index
    %c0_6 = arith.constant 0 : index
    %17 = vector.load %arg5[%c0_4, %c0_5, %c0_6] : memref<1x4x256xf32, #tpu.memory_space<vmem>>, vector<1x4x256xf32>
    tpu.vector_store %arg5[%c0_4, %c0_5, %c0_6], %16 {strides = array<i32>} : memref<1x4x256xf32, #tpu.memory_space<vmem>>, vector<1x4x256xf32>,
    return
  }
  func.func @transform_0(%arg0: i32, %arg1: i32, %arg2: i32) -> (i32, i32, i32) {
    %c0_i32 = arith.constant 0 : i32
    return %arg0, %arg1, %arg2 : i32, i32, i32
  }
  func.func @transform_1(%arg0: i32, %arg1: i32, %arg2: i32) -> (i32, i32) {
    %c0_i32 = arith.constant 0 : i32
    %c0_i32_0 = arith.constant 0 : i32
    return %arg1, %c0_i32 : i32, i32
  }
  func.func @transform_2(%arg0: i32, %arg1: i32, %arg2: i32) -> (i32, i32, i32) {
    %c0_i32 = arith.constant 0 : i32
    return %arg0, %arg1, %arg2 : i32, i32, i32
  }
}

</mosaic_0001>

<bundles_post_ra>
// kernel: tpu_custom_call.1
= control target key start
LH: loop header
LB: loop body
LE: loop exit
PB: predicated region body
PF: predicated region fallthrough
CT: control target
= control target key end

     0   :  { %7 = vsyncpa [#allocation3], 0  ;;  %s804_s0 = inlined_call_operand.hbm [shape: f32[2,4,256], index: 0, kind: input, shape index: {}]   ;;  %s805_s1 = inlined_call_operand.hbm [shape: f32[4,3], index: 1, kind: input, shape index: {}]   ;;  %s806_s2 = inlined_call_operand.hbm [shape: f32[2,4,256], index: 2, kind: output, shape index: {}]  }
   0x1   :  { %9 = vsyncpa [#allocation3 + $0x1], 0 }
   0x2   :  { %10 = vsyncpa [#allocation6], 0 }
   0x3   :  { %11 = vsyncpa [#allocation4], 0 }
   0x4   :  { %13 = vsyncpa [#allocation4 + $0x1], 0  ;;  %s651_s9 = smov 0   ;;  %s653_s10 = smov 0  }
   0x5   :  { %s655_s11 = smov 0   ;;  %s657_s12 = smov 0  }
   0x6   :  { %s659_s13 = smov 0   ;;  %s661_s14 = smov 0  }
   0x7 LB: > { %s383_s15 = sadd.s32 4294967295, %s629_s14   ;;  %s384_s16 = sadd.s32 4294967294, %s629_s14   ;;  %s629_s14 = sphi %s661_s14, %s19_s14   ;;  %s625_s13 = sphi %s659_s13, %s818_s13   ;;  %s621_s12 = sphi %s657_s12, %s817_s12   ;;  %s617_s11 = sphi %s655_s11, %s816_s11   ;;  %s613_s10 = sphi %s653_s10, %s815_s10   ;;  %s609_s9 = sphi %s651_s9, %s814_s9  }
   0x8   : > { %p62_p0 = scmp.ne.s32.totalorder %s613_s10, %s609_s9  ;;  %p685_p1 = scmp.eq.s32.totalorder %s383_s15, 0 }
   0x9   : > { %p689_p2 = scmp.eq.s32.totalorder %s383_s15, 1  ;;  %p122_p3 = scmp.eq.s32.totalorder %s384_s16, 1 }
   0xa   : > { %p695_p4 = por %p685_p1, %p62_p0  ;;  %p385_p5 = scmp.ge.s32.totalorder %s629_s14, 1 }
   0xb   : > { %p700_p6 = por %p122_p3, %p62_p0  ;;  %p129_p7 = scmp.lt.s32.totalorder %s629_s14, 3 }
   0xc   : > { %s143_s23 = sshll.u32 %s805_s1, 4  ;;  %p387_p9 = scmp.ge.s32.totalorder %s629_s14, 2  ;;  %s144_s23 = int_to_ptr.hbm [resolvable:$true] %s143_s23 }
   0xd   : > { %p708_p8 = pnand %p385_p5, %p129_p7  ;;  %s631_s25 = smov [#allocation5]  }
   0xe   : > { %s145_s26 = sshll.u32 %s631_s25, 4  ;;  %s38_s27 = sadd.s32 1, %s625_s13  ;;  %s146_s26 = int_to_ptr.vmem [resolvable:$true] %s145_s26 }
   0xf   : > { %p410_p10 = pneg %p708_p8  ;;  %p40_p12 = scmp.ge.s32.totalorder %s38_s27, 2 }
  0x10   : > { %s49_s28 = sadd.s32 1, %s617_s11  ;;  %p56_p13 = scmp.ne.s32.totalorder %s617_s11, %s613_s10 }
  0x11   : > { %p411_p11 = pnand %p410_p10, %p685_p1  ;;  %p57_p0 = scmp.eq.s32.totalorder %s629_s14, 0 }
  0x12   : > { %s820_s27 = smov (%p40_p12, %s38_s27), 0  ;;  %p730_p5 = por %p689_p2, %p56_p13 }
  0x13   : > { %413 = dma.hbm_to_vmem [thread:$0]  (!%p411_p11), %s144_s23, 64, %s146_s26, [#allocation6]  }
  0x14   : > { %p724_p3 = por %p57_p0, %p56_p13  ;;  %s42_s3 = ssub.s32 %s625_s13, %s820_s27 }
  0x15   : > { %p423_p7 = scmp.lt.s32.totalorder %s629_s14, 2  ;;  %p47_p10 = scmp.eq.s32.totalorder %s42_s3, 0 }
  0x16   : > { %s156_s4 = sand.u32 1, %s617_s11   ;;  %s400_s7 = sshll.u32 %s625_s13, 3 }
  0x17   : > { %s388_s5 = sshll.u32 %s156_s4, 3  ;;  %s169_s16 = scalar_lea.hbm %s804_s0, %s400_s7 }
  0x18   : > { %s739_s6 = scalar_select %p47_p10, %s617_s11, %s49_s28  }
  0x19   : > { %s160_s21 = scalar_lea.vmem [#allocation2], %s388_s5  ;;  %s171_s18 = sshll.u32 %s169_s16, 4  ;;  %s172_s18 = int_to_ptr.hbm [resolvable:$true] %s171_s18 }
  0x1a   : > { %s173_s22 = sshll.u32 %s160_s21, 4  ;;  %p415_p2 = pnand %p423_p7, %p724_p3  ;;  %s174_s22 = int_to_ptr.vmem [resolvable:$true] %s173_s22 }
  0x1b   : > { %s157_s23 = scalar_lea.sflag [#allocation3], %s156_s4  ;;  %182 = sbr.rel (%p708_p8) target bundleno = 175 (0xaf), region = 28 }
  0x1c   : > { %417 = dma.hbm_to_vmem [thread:$0]  (!%p415_p2), %s172_s18, 128, %s174_s22, %s157_s23  }
  0x1d   : > { %s750_s25 = sand.u32 (!%p708_p8), 1, %s613_s10  }
  0x1e   : > { %s392_s26 = sshll.u32 (!%p708_p8), %s750_s25, 3  ;;  %s185_s28 = scalar_lea.sflag (!%p708_p8), [#allocation3], %s750_s25 }
  0x1f   : > { %s188_s3 = scalar_lea.vmem (!%p708_p8), [#allocation2], %s392_s26 }
  0x20   : > { %596 = dma.done.wait (%p695_p4), %s185_s28, 128  }
  0x21   : > { %598 = vsyncadd (%p695_p4), %s185_s28, 4294967168 }
  0x22   : > { %600 = dma.done.wait (%p685_p1), [#allocation6], 64  }
  0x23   : > { %602 = vsyncadd (%p685_p1), [#allocation6], 4294967232  ;;  %v632_v0 = vmov 0   ;;  %v633_v1 = vmov 2   ;;  %v217_v2 = vld [vmem:[#allocation5] sm:$0xf] }
  0x24   : > { %479 = vset.pattern.permute.xlu0 %v632_v0  ;;  %481 = vset.pattern.permute.xlu1 %v633_v1  ;;  %v634_v3 = vmov 1   ;;  %v635_v4 = vmov 839922192   ;;  %v218_v7 = vld [vmem:[%s188_s3] sm:$0xff]  ;;  %s401_s17 = sshll.u32 %s621_s12, 3  ;;  %vm245_vm0 = vcmask 1043456  }
  0x25   : > { %221 = vperm.xlu0 %479, %v217_v2   ;;  %250 = vperm.xlu1 %481, %v217_v2   ;;  %v224_v5 = vunpack.c.l.s4 %v635_v4  ;;  %s275_s29 = scalar_lea.hbm %s806_s2, %s401_s17  ;;  %s214_s4 = scalar_lea.vmem [#allocation7], %s392_s26 }
  0x26   : > { %s277_s5 = sshll.u32 %s214_s4, 4  ;;  %s279_s7 = sshll.u32 %s275_s29, 4  ;;  %s278_s5 = int_to_ptr.vmem [resolvable:$true] %s277_s5  ;;  %s280_s7 = int_to_ptr.hbm [resolvable:$true] %s279_s7 }
  0x27   : > { %v225_v6 = vunpack.c.0.s8 %v224_v5  ;;  %s260_s12 = scalar_lea.sflag [#allocation4], %s750_s25  ;;  %s557_s8 = sshra.s32 %s280_s7, 4  ;;  %s558_s8 = int_to_ptr.hbm [resolvable:$true] %s557_s8 }
  0x28   : > { %s559_s15 = scalar_lea.hbm %s558_s8, 8  ;;  %s563_s22 = scalar_lea.hbm %s806_s2, 16 }
  0x29   : > { %p560_p1 = scmp.ne.s32.totalorder %s558_s8, %s559_s15  ;;  %p564_p11 = scmp.lt.s32.totalorder %s558_s8, %s806_s2 }
  0x2a   : > { %p565_p12 = scmp.lt.s32.totalorder %s563_s22, %s559_s15 }
  0x2b   : > { %p561_p4 = pnand %p560_p1, %p730_p5 }
  0x2c   : > { %p566_p13 = por %p565_p12, %p564_p11 }
  0x2d   : > { %480 = vset.pattern.permute.xlu0 %v634_v3  ;;  %p562_p8 = pneg %p561_p4 }
  0x2e   : > { %231 = vperm.xlu0 %480, %v217_v2  }
  0x2f   : > { %p567_p0 = pnand %p566_p13, %p562_p8 }
  0x36   : > { %482 = vset.pattern.permute.xlu0 %v633_v1 }
  0x97   : > { %v222_v8 = vpop.permute.xlu0 %221  ;;  %v251_v14 = vpop.permute.xlu1 %250 }
  0x98   : > { %v226_v9 = vperm.slane %v222_v8, %v225_v6  ;;  %v255_v18 = vperm.slane %v251_v14, %v225_v6 }
  0x9a   : > { %v228_v10 = vadd.f32 %v226_v9, %v218_v7 }
  0x9c   : > { %235 = vst [vmem:[#allocation1] ss:$2 sm:$0xff] %v228_v10  ;;  %vm229_vm1 = vcmp.ge.f32.partialorder %v228_v10, 0.0 }
  0xa0   : > { %v232_v11 = vpop.permute.xlu0 %231 }
  0xa3   : > { %v236_v12 = vld.sshfl [vmem:[#allocation1] sm:$0xff pattern:$0x75316420]  ;;  %v237_v13 = vld.sshfl [vmem:[#allocation1 + $0x8] sm:$0xff pattern:$0x75316420] }
  0xa4   : > { %v241_v15 = vmul.f32 %v237_v13, %v232_v11  ;;  %v240_v16 = vmul.f32 %v236_v12, %v232_v11 }
  0xa6   : > { %v244_v17 = vrot.slane %v241_v15, 4 }
  0xa8   : > { %v246_v19 = vsel %vm245_vm0, %v240_v16, %v244_v17 }
  0xa9   : > { %v248_v20 = vsel %vm229_vm1, %v228_v10, %v246_v19 }
  0xaa   : > { %v257_v21 = vadd.f32 %v255_v18, %v248_v20 }
  0xac   : > { %258 = vst [vmem:[%s214_s4] sm:$0xff] %v257_v21 }
  0xad   : > { %570 = shalt.err (!%p567_p0)
}
  0xae   : > { %408 = dma.vmem_to_hbm [thread:$0]  (%p730_p5), %s278_s5, 128, %s280_s7, %s260_s12  }
  0xaf PF: > { %s291_s25 = sand.u32 1, %s609_s9   ;;  %p419_p3 = pnand %p387_p9, %p700_p6 }
  0xb0   : > { %s292_s26 = scalar_lea.sflag [#allocation4], %s291_s25 }
  0xb1   : > { %p420_p7 = pneg %p419_p3 }
  0xb3   : > { %604 = dma.done.wait (%p420_p7), %s292_s26, 128  }
  0xb4   : > { %606 = vsyncadd (%p420_p7), %s292_s26, 4294967168  ;;  %s19_s14 = sadd.s32 1, %s629_s14   ;;  %s814_s9 = smov %s613_s10 }
  0xb5   : > { %p16_p10 = scmp.ge.s32.totalorder %s19_s14, 4   ;;  %s815_s10 = smov %s617_s11 }
  0xb6   : > { %s816_s11 = smov %s739_s6  ;;  %s817_s12 = smov %s625_s13 }
  0xb7   : > { %s818_s13 = smov %s820_s27  ;;  %18 = sbr.rel (!%p16_p10) target bundleno = 7 (0x7), region = 78 }
  0xbc   :  { %298 = vsyncpa [#allocation3], 1 }
  0xbd   :  { %300 = vsyncpa [#allocation3 + $0x1], 1 }
  0xbe   :  { %301 = vsyncpa [#allocation6], 1 }
  0xbf   :  { %302 = vsyncpa [#allocation4], 1 }
  0xc0   :  { %304 = vsyncpa [#allocation4 + $0x1], 1 }

</bundles_post_ra>
